<compile_context>
chip_gen: v7x
topology: tpu7x:2x2x1
jax: 0.10.0
libtpu: 0.0.40
codegen_flags: <defaults>
</compile_context>

<pallas_src>
import functools

import jax
import jax.numpy as jnp
from jax.experimental import pallas as pl
from jax.experimental.pallas import tpu as pltpu

# Problem sizes (match the module: Conv2d(4,16,3,p=1) / Conv2d(16,4,3,p=1))
H = 16
W = 16
CIN = 4
CMID = 16
COUT = 4
KH = 3  # 3x3 kernel


def encoder_kernel(x_ref, w1_ref, b1_ref, w2_ref, b2_ref, o_ref, *, tb):
    """One batch-tile (tb images) per grid step.

    x_ref : (tb, H, W*CIN)        bf16 input slab, channels folded into lanes
    w1_ref: (KH*W*CIN, W*CMID)    bf16 conv1 weights, 3 H-taps folded into K (=192)
    b1_ref: (1, W*CMID)           f32 conv1 bias tiled over w
    w2_ref: (KH*W*CMID, W*COUT)   bf16 conv2 weights, 3 H-taps folded into K (=768)
    b2_ref: (1, W*COUT)           f32 conv2 bias tiled over w
    o_ref : (tb*H, W*COUT)        f32 lane-dense output slab
    """
    rows = tb * H

    # ---- conv1: 3x3, padding=1, CIN -> CMID, then ReLU (single MXU matmul) ----
    x = x_ref[...]                                             # (tb, H, 64) bf16
    z1 = jnp.zeros((tb, 1, W * CIN), x.dtype)
    dn = jnp.concatenate([z1, x[:, :H - 1, :]], axis=1)        # row h holds x[h-1] (dh=0)
    up = jnp.concatenate([x[:, 1:, :], z1], axis=1)            # row h holds x[h+1] (dh=2)
    lhs1 = jnp.concatenate([dn, x, up], axis=-1).reshape(rows, KH * W * CIN)
    acc1 = jnp.dot(lhs1, w1_ref[...], preferred_element_type=jnp.float32)  # (rows, 256)
    hid = jnp.maximum(acc1 + b1_ref[...], 0.0).astype(jnp.bfloat16)

    # ---- conv2: 3x3, padding=1, CMID -> COUT (single MXU matmul) ----
    h3 = hid.reshape(tb, H, W * CMID)
    z2 = jnp.zeros((tb, 1, W * CMID), h3.dtype)
    dn2 = jnp.concatenate([z2, h3[:, :H - 1, :]], axis=1)
    up2 = jnp.concatenate([h3[:, 1:, :], z2], axis=1)
    lhs2 = jnp.concatenate([dn2, h3, up2], axis=-1).reshape(rows, KH * W * CMID)
    acc2 = jnp.dot(lhs2, w2_ref[...], preferred_element_type=jnp.float32)  # (rows, 64)
    o_ref[...] = (acc2 + b2_ref[...]).astype(o_ref.dtype)


def make_banded(w_hwio, width):
    """Fold the dw taps of a 3x3 conv into block-banded matmul weights.

    w_hwio: (3, 3, cin, cout) -> (3, width*cin, width*cout) with
      out[dh, wi*cin+ci, wo*cout+co] = w[dh, wi-wo+1, ci, co] if |wi-wo| <= 1 else 0.
    The conv's zero-padding in W is realized by the band edges.  The caller reshapes
    to (3*width*cin, width*cout) to also fold the dh taps into the matmul K dim.
    """
    kh, kw, cin, cout = w_hwio.shape
    wi = jnp.arange(width)[None, :, None]
    wo = jnp.arange(width)[None, None, :]
    dw = jnp.arange(kw)[:, None, None]
    sel = (wi == wo + dw - 1).astype(w_hwio.dtype)             # (kw, width, width)
    banded = jnp.einsum("dxy,hdio->hxiyo", sel, w_hwio)        # (kh, W, cin, W, cout)
    return banded.reshape(kh, width * cin, width * cout)


def simple_encoder_forward(x_nchw, t, params, *, tb=None):
    """Mirrors SimpleEncoder.forward(x, t): returns net(x) in NCHW."""
    w1, b1, w2, b2, wt, bt = params
    B = x_nchw.shape[0]
    assert x_nchw.shape[1:] == (CIN, H, W)

    # time_embed branch (dead code in the reference module — computed, then discarded)
    _t_emb = t.reshape(-1, 1) @ wt.T + bt                      # (B, 16)
    del _t_emb

    if tb is None:
        # One grid step when B <= 128 (~12 MiB peak VMEM/step in bf16); larger batches
        # tile at 128 images/step, which keeps per-step pipeline overhead negligible
        # and gives multi-TC chips (v7x) a multi-step "parallel" grid to shard.
        tb = min(B, 128)
    nb = pl.cdiv(B, tb)
    b_pad = nb * tb

    # NCHW -> NHWC -> (B, H, W*CIN): channels fold into lanes; bf16 data path.
    x = jnp.transpose(x_nchw, (0, 2, 3, 1)).reshape(B, H, W * CIN).astype(jnp.bfloat16)
    if b_pad != B:
        x = jnp.concatenate(
            [x, jnp.zeros((b_pad - B, H, W * CIN), jnp.bfloat16)], axis=0)

    # bf16 weights (MXU-native on all generations); biases stay f32 (added to f32 acc).
    w1f = make_banded(w1.astype(jnp.float32), W).reshape(
        KH * W * CIN, W * CMID).astype(jnp.bfloat16)            # (192, 256)
    w2f = make_banded(w2.astype(jnp.float32), W).reshape(
        KH * W * CMID, W * COUT).astype(jnp.bfloat16)           # (768, 64)
    b1r = jnp.tile(b1.astype(jnp.float32), W).reshape(1, W * CMID)
    b2r = jnp.tile(b2.astype(jnp.float32), W).reshape(1, W * COUT)

    flops = 2 * b_pad * H * (KH * W * CIN * W * CMID + KH * W * CMID * W * COUT)
    bytes_accessed = (x.size * 2 + w1f.size * 2 + w2f.size * 2
                      + b1r.size * 4 + b2r.size * 4 + b_pad * H * W * COUT * 4)

    out = pl.pallas_call(
        functools.partial(encoder_kernel, tb=tb),
        out_shape=jax.ShapeDtypeStruct((b_pad * H, W * COUT), jnp.float32),
        grid_spec=pltpu.PrefetchScalarGridSpec(
            num_scalar_prefetch=0,
            grid=(nb,),
            in_specs=[
                pl.BlockSpec((tb, H, W * CIN), lambda b: (b, 0, 0)),
                pl.BlockSpec((KH * W * CIN, W * CMID), lambda b: (0, 0)),
                pl.BlockSpec((1, W * CMID), lambda b: (0, 0)),
                pl.BlockSpec((KH * W * CMID, W * COUT), lambda b: (0, 0)),
                pl.BlockSpec((1, W * COUT), lambda b: (0, 0)),
            ],
            out_specs=pl.BlockSpec((tb * H, W * COUT), lambda b: (b, 0)),
        ),
        compiler_params=pltpu.CompilerParams(
            dimension_semantics=("parallel",),
            vmem_limit_bytes=32 * 1024 * 1024,
        ),
        cost_estimate=pl.CostEstimate(flops=flops, transcendentals=0,
                                      bytes_accessed=bytes_accessed),
    )(x, w1f, b1r, w2f, b2r)

    out = out.reshape(b_pad, H, W, COUT)[:B]
    return jnp.transpose(out, (0, 3, 1, 2))                    # back to NCHW


def reference_forward(x_nchw, params):
    """Pure-JAX reference (lax.conv, f32) for correctness checking."""
    w1, b1, w2, b2, _, _ = params
    x = jnp.transpose(x_nchw, (0, 2, 3, 1))
    dn1 = jax.lax.conv_dimension_numbers(x.shape, w1.shape, ("NHWC", "HWIO", "NHWC"))
    h = jax.lax.conv_general_dilated(x, w1, (1, 1), "SAME", dimension_numbers=dn1) + b1
    h = jnp.maximum(h, 0.0)
    dn2 = jax.lax.conv_dimension_numbers(h.shape, w2.shape, ("NHWC", "HWIO", "NHWC"))
    o = jax.lax.conv_general_dilated(h, w2, (1, 1), "SAME", dimension_numbers=dn2) + b2
    return jnp.transpose(o, (0, 3, 1, 2))


def init_params(key):
    k1, k2, k3, k4, k5, k6 = jax.random.split(key, 6)
    w1 = 0.1 * jax.random.normal(k1, (3, 3, CIN, CMID), jnp.float32)   # HWIO
    b1 = 0.1 * jax.random.normal(k2, (CMID,), jnp.float32)
    w2 = 0.1 * jax.random.normal(k3, (3, 3, CMID, COUT), jnp.float32)  # HWIO
    b2 = 0.1 * jax.random.normal(k4, (COUT,), jnp.float32)
    wt = 0.1 * jax.random.normal(k5, (16, 1), jnp.float32)             # Linear(1, 16)
    bt = 0.1 * jax.random.normal(k6, (16,), jnp.float32)
    return (w1, b1, w2, b2, wt, bt)


if __name__ == "__main__":
    key = jax.random.PRNGKey(0)
    kx, kt, kp = jax.random.split(key, 3)

    B = 2
    x = jax.random.normal(kx, (B, CIN, H, W), jnp.float32)   # NCHW, like PyTorch
    t = jax.random.uniform(kt, (B,), jnp.float32)
    params = init_params(kp)

    out = jax.block_until_ready(simple_encoder_forward(x, t, params))
    ref = jax.block_until_ready(reference_forward(x, params))

    assert out.shape == (B, COUT, H, W), out.shape
    # bf16 matmuls with f32 accumulation -> loosened tolerance vs the f32 reference.
    assert jnp.allclose(out, ref, rtol=5e-2, atol=5e-2), "mismatch vs JAX conv reference"

    print("KERNEL_OK")
</pallas_src>

<mosaic_0001>
module attributes {stable_mosaic.version = 11 : i64} {
  func.func @encoder_kernel(%arg0: i32, %arg1: memref<2x16x64xbf16, #tpu.memory_space<vmem>>, %arg2: memref<192x256xbf16, #tpu.memory_space<vmem>>, %arg3: memref<1x256xf32, #tpu.memory_space<vmem>>, %arg4: memref<768x64xbf16, #tpu.memory_space<vmem>>, %arg5: memref<1x64xf32, #tpu.memory_space<vmem>>, %arg6: memref<32x64xf32, #tpu.memory_space<vmem>>) attributes {dimension_semantics = [#tpu.dimension_semantics<parallel>], iteration_bounds = array<i64: 1>, scalar_prefetch = 0 : i64, scratch_operands = 0 : i64, tpu.core_type = #tpu.core_type<tc>, window_params = [{transform_indices = @transform_0, window_bounds = array<i64: 2, 16, 64>}, {pipeline_mode = #tpu.pipeline_mode<synchronous>, transform_indices = @transform_1, window_bounds = array<i64: 192, 256>}, {pipeline_mode = #tpu.pipeline_mode<synchronous>, transform_indices = @transform_2, window_bounds = array<i64: 1, 256>}, {pipeline_mode = #tpu.pipeline_mode<synchronous>, transform_indices = @transform_3, window_bounds = array<i64: 768, 64>}, {pipeline_mode = #tpu.pipeline_mode<synchronous>, transform_indices = @transform_4, window_bounds = array<i64: 1, 64>}, {transform_indices = @transform_5, window_bounds = array<i64: 32, 64>}]} {
    %c0 = arith.constant 0 : index
    %c0_0 = arith.constant 0 : index
    %c0_1 = arith.constant 0 : index
    %0 = vector.load %arg1[%c0, %c0_0, %c0_1] : memref<2x16x64xbf16, #tpu.memory_space<vmem>>, vector<2x16x64xbf16>
    %cst = arith.constant 0.000000e+00 : bf16
    %1 = vector.broadcast %cst : bf16 to vector<2x1x64xbf16>
    %2 = vector.extract_strided_slice %0 {offsets = [0, 0, 0], sizes = [2, 15, 64], strides = [1, 1, 1]} : vector<2x16x64xbf16> to vector<2x15x64xbf16>
    %3 = tpu.concatenate %1, %2 in 1 : vector<2x1x64xbf16>, vector<2x15x64xbf16> -> vector<2x16x64xbf16>
    %4 = vector.extract_strided_slice %0 {offsets = [0, 1, 0], sizes = [2, 15, 64], strides = [1, 1, 1]} : vector<2x16x64xbf16> to vector<2x15x64xbf16>
    %5 = tpu.concatenate %4, %1 in 1 : vector<2x15x64xbf16>, vector<2x1x64xbf16> -> vector<2x16x64xbf16>
    %6 = tpu.concatenate %3, %0, %5 in 2 : vector<2x16x64xbf16>, vector<2x16x64xbf16>, vector<2x16x64xbf16> -> vector<2x16x192xbf16>
    %7 = vector.shape_cast %6 : vector<2x16x192xbf16> to vector<32x192xbf16>
    %c0_2 = arith.constant 0 : index
    %c0_3 = arith.constant 0 : index
    %8 = vector.load %arg2[%c0_2, %c0_3] : memref<192x256xbf16, #tpu.memory_space<vmem>>, vector<192x256xbf16>
    %cst_4 = arith.constant dense<0.000000e+00> : vector<32x256xf32>
    %9 = tpu.matmul %7, %8, %cst_4 {dimension_numbers = #tpu.dot_dimension_numbers<[1], [0], [0], [1], [0, 0, 1, 1], [], []>} : vector<32x192xbf16>, vector<192x256xbf16>, vector<32x256xf32> -> vector<32x256xf32>
    %c0_5 = arith.constant 0 : index
    %c0_6 = arith.constant 0 : index
    %10 = vector.load %arg3[%c0_5, %c0_6] : memref<1x256xf32, #tpu.memory_space<vmem>>, vector<1x256xf32>
    %11 = vector.broadcast %10 : vector<1x256xf32> to vector<32x256xf32>
    %12 = arith.addf %9, %11 : vector<32x256xf32>
    %cst_7 = arith.constant 0.000000e+00 : f32
    %13 = vector.broadcast %cst_7 : f32 to vector<32x256xf32>
    %14 = arith.maximumf %12, %13 : vector<32x256xf32>
    %15 = arith.truncf %14 : vector<32x256xf32> to vector<32x256xbf16>
    %16 = vector.shape_cast %15 : vector<32x256xbf16> to vector<2x16x256xbf16>
    %cst_8 = arith.constant 0.000000e+00 : bf16
    %17 = vector.broadcast %cst_8 : bf16 to vector<2x1x256xbf16>
    %18 = vector.extract_strided_slice %16 {offsets = [0, 0, 0], sizes = [2, 15, 256], strides = [1, 1, 1]} : vector<2x16x256xbf16> to vector<2x15x256xbf16>
    %19 = tpu.concatenate %17, %18 in 1 : vector<2x1x256xbf16>, vector<2x15x256xbf16> -> vector<2x16x256xbf16>
    %20 = vector.extract_strided_slice %16 {offsets = [0, 1, 0], sizes = [2, 15, 256], strides = [1, 1, 1]} : vector<2x16x256xbf16> to vector<2x15x256xbf16>
    %21 = tpu.concatenate %20, %17 in 1 : vector<2x15x256xbf16>, vector<2x1x256xbf16> -> vector<2x16x256xbf16>
    %22 = tpu.concatenate %19, %16, %21 in 2 : vector<2x16x256xbf16>, vector<2x16x256xbf16>, vector<2x16x256xbf16> -> vector<2x16x768xbf16>
    %23 = vector.shape_cast %22 : vector<2x16x768xbf16> to vector<32x768xbf16>
    %c0_9 = arith.constant 0 : index
    %c0_10 = arith.constant 0 : index
    %24 = vector.load %arg4[%c0_9, %c0_10] : memref<768x64xbf16, #tpu.memory_space<vmem>>, vector<768x64xbf16>
    %cst_11 = arith.constant dense<0.000000e+00> : vector<32x64xf32>
    %25 = tpu.matmul %23, %24, %cst_11 {dimension_numbers = #tpu.dot_dimension_numbers<[1], [0], [0], [1], [0, 0, 1, 1], [], []>} : vector<32x768xbf16>, vector<768x64xbf16>, vector<32x64xf32> -> vector<32x64xf32>
    %c0_12 = arith.constant 0 : index
    %c0_13 = arith.constant 0 : index
    %26 = vector.load %arg5[%c0_12, %c0_13] : memref<1x64xf32, #tpu.memory_space<vmem>>, vector<1x64xf32>
    %27 = vector.broadcast %26 : vector<1x64xf32> to vector<32x64xf32>
    %28 = arith.addf %25, %27 : vector<32x64xf32>
    %c0_14 = arith.constant 0 : index
    %c0_15 = arith.constant 0 : index
    %29 = vector.load %arg6[%c0_14, %c0_15] : memref<32x64xf32, #tpu.memory_space<vmem>>, vector<32x64xf32>
    tpu.vector_store %arg6[%c0_14, %c0_15], %28 {strides = array<i32>} : memref<32x64xf32, #tpu.memory_space<vmem>>, vector<32x64xf32>,
    return
  }
  func.func @transform_0(%arg0: i32) -> (i32, i32, i32) {
    %c0_i32 = arith.constant 0 : i32
    %c0_i32_0 = arith.constant 0 : i32
    %c0_i32_1 = arith.constant 0 : i32
    return %arg0, %c0_i32, %c0_i32_0 : i32, i32, i32
  }
  func.func @transform_1(%arg0: i32) -> (i32, i32) {
    %c0_i32 = arith.constant 0 : i32
    %c0_i32_0 = arith.constant 0 : i32
    %c0_i32_1 = arith.constant 0 : i32
    return %c0_i32, %c0_i32_0 : i32, i32
  }
  func.func @transform_2(%arg0: i32) -> (i32, i32) {
    %c0_i32 = arith.constant 0 : i32
    %c0_i32_0 = arith.constant 0 : i32
    %c0_i32_1 = arith.constant 0 : i32
    return %c0_i32, %c0_i32_0 : i32, i32
  }
  func.func @transform_3(%arg0: i32) -> (i32, i32) {
    %c0_i32 = arith.constant 0 : i32
    %c0_i32_0 = arith.constant 0 : i32
    %c0_i32_1 = arith.constant 0 : i32
    return %c0_i32, %c0_i32_0 : i32, i32
  }
  func.func @transform_4(%arg0: i32) -> (i32, i32) {
    %c0_i32 = arith.constant 0 : i32
    %c0_i32_0 = arith.constant 0 : i32
    %c0_i32_1 = arith.constant 0 : i32
    return %c0_i32, %c0_i32_0 : i32, i32
  }
  func.func @transform_5(%arg0: i32) -> (i32, i32) {
    %c0_i32 = arith.constant 0 : i32
    %c0_i32_0 = arith.constant 0 : i32
    return %arg0, %c0_i32 : i32, i32
  }
}

</mosaic_0001>

<bundles_post_ra>
// kernel: tpu_custom_call.1
= control target key start
LH: loop header
LB: loop body
LE: loop exit
PB: predicated region body
PF: predicated region fallthrough
CT: control target
= control target key end

     0   :  { %s1193_s22 = smov 64   ;;  %vm63_vm0 = vcmask 1047552   ;;  %vm64_vm1 = vsmask.f32 7424  ;;  %vm72_vm2 = vcmask 523264   ;;  %s1525_s0 = inlined_call_operand.vmem [shape: bf16[2,16,64], index: 0, kind: input, shape index: {}]   ;;  %s1526_s1 = inlined_call_operand.vmem [shape: bf16[192,256], index: 1, kind: input, shape index: {}]   ;;  %s1527_s2 = inlined_call_operand.vmem [shape: f32[1,256], index: 2, kind: input, shape index: {}]   ;;  %s1528_s3 = inlined_call_operand.vmem [shape: bf16[768,64], index: 3, kind: input, shape index: {}]   ;;  %s1529_s4 = inlined_call_operand.vmem [shape: f32[1,64], index: 4, kind: input, shape index: {}]   ;;  %s1530_s5 = inlined_call_operand.hbm [shape: f32[32,64], index: 5, kind: output, shape index: {}]  }
   0x1   :  { %v1083_v0 = vld [vmem:[%s1525_s0] sm:$0xff]   ;;  %v1233_v1 = vld [vmem:[%s1525_s0 + $0x8] sm:$0xff]   ;;  %v1088_v5 = vld [vmem:[%s1526_s1 + $0x14] ss:$8 sps:$4 sm:$0xff]  }
   0x2   :  { %68 = vrot.lane.b32.xlu0 %v1083_v0, %s1193_s22  ;;  %v1085_v2 = vld [vmem:[%s1526_s1 + $0x4] ss:$8 sps:$4 sm:$0xff]   ;;  %v37_v3 = vshrl.u32 %v1083_v0, 16  ;;  %v1087_v4 = vld [vmem:[%s1526_s1] ss:$8 sps:$4 sm:$0xff]   ;;  %v40_v7 = vshll.u32 %v1083_v0, 16  ;;  %vm1271_vm3 = vmand %vm63_vm0, %vm64_vm1 }
   0x3   :  { %243 = vmatprep.subr.bf16.mxu0 %v1085_v2  ;;  %v1090_v8 = vld [vmem:[%s1526_s1 + $0x10] ss:$8 sps:$4 sm:$0xff]   ;;  %v1091_v9 = vld [vmem:[%s1526_s1 + $0x24] ss:$8 sps:$4 sm:$0xff]   ;;  %v1093_v11 = vld [vmem:[%s1526_s1 + $0x20] ss:$8 sps:$4 sm:$0xff]  }
   0x4   :  { %v39_v6 = vrot.slane %v37_v3, 7  ;;  %244 = vmatpush1.bf16.msra.mxu0 %v1087_v4  ;;  %v1094_v12 = vld [vmem:[%s1526_s1 + $0x34] ss:$8 sps:$4 sm:$0xff]   ;;  %v57_v13 = vrot.slane %v40_v7, 1  ;;  %v1096_v14 = vld [vmem:[%s1526_s1 + $0x30] ss:$8 sps:$4 sm:$0xff]  }
   0x5   :  { %245 = vmatprep.subr.bf16.mxu0 %v1088_v5  ;;  %v1097_v15 = vld [vmem:[%s1526_s1 + $0x44] ss:$8 sps:$4 sm:$0xff]   ;;  %v1099_v17 = vld [vmem:[%s1526_s1 + $0x40] ss:$8 sps:$4 sm:$0xff]   ;;  %v1100_v18 = vld [vmem:[%s1526_s1 + $0x54] ss:$8 sps:$4 sm:$0xff]  }
   0x6   :  { %70 = vrot.lane.b32.xlu0 %v1233_v1, %s1193_s22  ;;  %v1251_v10 = vor.u32 %v40_v7, %v39_v6  ;;  %v58_v16 = vor.u32 %v57_v13, %v37_v3  ;;  %v1121_v21 = vld [vmem:[%s1528_s3 + $0x40] sm:$0xff]   ;;  %v1102_v22 = vld [vmem:[%s1526_s1 + $0x50] ss:$8 sps:$4 sm:$0xff]   ;;  %v1125_v25 = vld [vmem:[%s1528_s3 + $0x48] sm:$0xff]  }
   0x7   :  { %v1122_v23 = vld [vmem:[%s1528_s3] sm:$0xff]   ;;  %995 = vmatprep.subr.bf16.mxu1 %v1121_v21  ;;  %v1126_v26 = vld [vmem:[%s1528_s3 + $0x8] sm:$0xff]   ;;  %v1106_v28 = vld [vmem:[%s1526_s1 + $0x74] ss:$8 sps:$4 sm:$0xff]  }
   0x8   :  { %246 = vmatpush1.bf16.msra.mxu0 %v1090_v8  ;;  %v66_v20 = vsel %vm1271_vm3, %v58_v16, 0  ;;  %v1103_v24 = vld [vmem:[%s1526_s1 + $0x64] ss:$8 sps:$4 sm:$0xff]   ;;  %996 = vmatpush3.bf16.msra.mxu1 %v1122_v23  ;;  %v1105_v27 = vld [vmem:[%s1526_s1 + $0x60] ss:$8 sps:$4 sm:$0xff]   ;;  %v1129_v29 = vld [vmem:[%s1528_s3 + $0x50] sm:$0xff]  }
   0x9   :  { %247 = vmatprep.subr.bf16.mxu0 %v1091_v9  ;;  %944 = vmatprep.mubr.msk.bf16.mxu0 %vm72_vm2, %v66_v20  ;;  %v1130_v30 = vld [vmem:[%s1528_s3 + $0x10] sm:$0xff]   ;;  %v1109_v32 = vld [vmem:[%s1526_s1 + $0x84] ss:$8 sps:$4 sm:$0xff]   ;;  %v1133_v33 = vld [vmem:[%s1528_s3 + $0x58] sm:$0xff]  }
   0xa   :  { %997 = vmatprep.subr.bf16.mxu1 %v1125_v25  ;;  %v1108_v31 = vld [vmem:[%s1526_s1 + $0x70] ss:$8 sps:$4 sm:$0xff]   ;;  %v1111_v35 = vld [vmem:[%s1526_s1 + $0x80] ss:$8 sps:$4 sm:$0xff]   ;;  %v1112_v36 = vld [vmem:[%s1526_s1 + $0x94] ss:$8 sps:$4 sm:$0xff]  }
   0xb   :  { %v1134_v34 = vld [vmem:[%s1528_s3 + $0x18] sm:$0xff]   ;;  %v1115_v38 = vld [vmem:[%s1526_s1 + $0xa4] ss:$8 sps:$4 sm:$0xff]   ;;  %v1117_v39 = vld [vmem:[%s1526_s1 + $0xa0] ss:$8 sps:$4 sm:$0xff]  }
   0xc   :  { %248 = vmatpush1.bf16.msra.mxu0 %v1093_v11  ;;  %998 = vmatpush3.bf16.msra.mxu1 %v1126_v26  ;;  %v1114_v37 = vld [vmem:[%s1526_s1 + $0x90] ss:$8 sps:$4 sm:$0xff]   ;;  %v1118_v40 = vld [vmem:[%s1526_s1 + $0xb4] ss:$8 sps:$4 sm:$0xff]   ;;  %v1123_v42 = vld [vmem:[%s1528_s3 + $0x140] sm:$0xff]  }
   0xd   :  { %249 = vmatprep.subr.bf16.mxu0 %v1094_v12  ;;  %999 = vmatprep.subr.bf16.mxu1 %v1129_v29  ;;  %v1120_v41 = vld [vmem:[%s1526_s1 + $0xb0] ss:$8 sps:$4 sm:$0xff]  }
  0x10   :  { %250 = vmatpush1.bf16.msra.mxu0 %v1096_v14  ;;  %1000 = vmatpush3.bf16.msra.mxu1 %v1130_v30 }
  0x11   :  { %251 = vmatprep.subr.bf16.mxu0 %v1097_v15  ;;  %1001 = vmatprep.subr.bf16.mxu1 %v1133_v33 }
  0x14   :  { %252 = vmatpush1.bf16.msra.mxu0 %v1099_v17  ;;  %1002 = vmatpush3.bf16.msra.mxu1 %v1134_v34 }
  0x15   :  { %253 = vmatprep.subr.bf16.mxu0 %v1100_v18 }
  0x18   :  { %254 = vmatpush1.bf16.msra.mxu0 %v1102_v22 }
  0x19   :  { %255 = vmatprep.subr.bf16.mxu0 %v1103_v24 }
  0x1c   :  { %256 = vmatpush1.bf16.msra.mxu0 %v1105_v27 }
  0x1d   :  { %257 = vmatprep.subr.bf16.mxu0 %v1106_v28 }
  0x20   :  { %258 = vmatpush1.bf16.msra.mxu0 %v1108_v31 }
  0x21   :  { %259 = vmatprep.subr.bf16.mxu0 %v1109_v32 }
  0x24   :  { %260 = vmatpush1.bf16.msra.mxu0 %v1111_v35 }
  0x25   :  { %261 = vmatprep.subr.bf16.mxu0 %v1112_v36 }
  0x28   :  { %262 = vmatpush1.bf16.msra.mxu0 %v1114_v37 }
  0x29   :  { %263 = vmatprep.subr.bf16.mxu0 %v1115_v38 }
  0x2c   :  { %264 = vmatpush1.bf16.msra.mxu0 %v1117_v39 }
  0x2d   :  { %265 = vmatprep.subr.bf16.mxu0 %v1118_v40 }
  0x30   :  { %266 = vmatpush1.bf16.msra.mxu0 %v1120_v41 }
  0x31   :  { %1051 = vmatprep.subr.bf16.mxu0 %v1123_v42 }
  0x32   :  { %10 = vsyncpa [#allocation3], 0  ;;  %v47_v43 = vshll.u32 %v1233_v1, 16  ;;  %vm52_vm4 = vcmask 1040384   ;;  %vm53_vm5 = vsmask.f32 256  ;;  %v107_v17 = vlaneseq }
  0x33   :  { %v44_v44 = vshrl.u32 %v1233_v1, 16  ;;  %vm1346_vm6 = vmand %vm52_vm4, %vm53_vm5  ;;  %v1124_v50 = vld [vmem:[%s1528_s3 + $0x100] sm:$0xff]   ;;  %v1127_v54 = vld [vmem:[%s1528_s3 + $0x148] sm:$0xff]  }
  0x34   :  { %v59_v45 = vrot.slane %v47_v43, 1  ;;  %v55_v49 = vsel %vm1346_vm6, 0, %v1251_v10  ;;  %v1128_v56 = vld [vmem:[%s1528_s3 + $0x108] sm:$0xff]   ;;  %v1131_v59 = vld [vmem:[%s1528_s3 + $0x150] sm:$0xff]   ;;  %v1135_v62 = vld [vmem:[%s1528_s3 + $0x158] sm:$0xff]   ;;  %v108_v18 = vshrl.u32 %v107_v17, 7 }
  0x35   :  { %v46_v48 = vrot.slane %v44_v44, 7  ;;  %v1132_v61 = vld [vmem:[%s1528_s3 + $0x110] sm:$0xff]   ;;  %v1136_v63 = vld [vmem:[%s1528_s3 + $0x118] sm:$0xff]   ;;  %v1137_v0 = vld [vmem:[%s1528_s3 + $0x60] sm:$0xff]  }
  0x36   :  { %v60_v47 = vor.u32 %v59_v45, %v44_v44  ;;  %v1138_v1 = vld [vmem:[%s1528_s3 + $0x20] sm:$0xff]   ;;  %1003 = vmatprep.subr.bf16.mxu1 %v1137_v0  ;;  %v1141_v4 = vld [vmem:[%s1528_s3 + $0x68] sm:$0xff]   ;;  %v1145_v8 = vld [vmem:[%s1528_s3 + $0x70] sm:$0xff]   ;;  %v109_v20 = vsub.s32 0, %v108_v18  ;;  %v113_v22 = vsub.s32 1, %v108_v18 }
  0x37   :  { %v49_v53 = vor.u32 %v47_v43, %v46_v48  ;;  %v1139_v2 = vld [vmem:[%s1528_s3 + $0x160] sm:$0xff]   ;;  %1004 = vmatpush3.bf16.msra.mxu1 %v1138_v1  ;;  %v1142_v5 = vld [vmem:[%s1528_s3 + $0x28] sm:$0xff]   ;;  %v1146_v9 = vld [vmem:[%s1528_s3 + $0x30] sm:$0xff]  }
  0x38   :  { %v67_v52 = vsel %vm1271_vm3, %v60_v47, 0  ;;  %v1140_v3 = vld [vmem:[%s1528_s3 + $0x120] sm:$0xff]   ;;  %v1143_v6 = vld [vmem:[%s1528_s3 + $0x168] sm:$0xff]   ;;  %1005 = vmatprep.subr.bf16.mxu1 %v1141_v4  ;;  %v1147_v10 = vld [vmem:[%s1528_s3 + $0x170] sm:$0xff]  }
  0x39   :  { %v56_v58 = vsel %vm1346_vm6, 0, %v49_v53  ;;  %v1144_v7 = vld [vmem:[%s1528_s3 + $0x128] sm:$0xff]   ;;  %v1148_v11 = vld [vmem:[%s1528_s3 + $0x130] sm:$0xff]   ;;  %v1149_v12 = vld [vmem:[%s1528_s3 + $0x78] sm:$0xff]  }
  0x3a   :  { %v1150_v13 = vld [vmem:[%s1528_s3 + $0x38] sm:$0xff]   ;;  %v1153_v16 = vld [vmem:[%s1528_s3 + $0xc0] sm:$0xff]  }
  0x3b   :  { %1006 = vmatpush3.bf16.msra.mxu1 %v1142_v5  ;;  %v1151_v14 = vld [vmem:[%s1528_s3 + $0x178] sm:$0xff]   ;;  %v105_v21 = vld [vmem:[%s1527_s2] sm:$0x3]  ;;  %v1155_v5 = vld [vmem:[%s1528_s3 + $0xc8] sm:$0xff]  }
  0x3c   :  { %1007 = vmatprep.subr.bf16.mxu1 %v1145_v8  ;;  %v1152_v15 = vld [vmem:[%s1528_s3 + $0x138] sm:$0xff]   ;;  %v110_v23 = vrot.slane %v105_v21, %v109_v20  ;;  %v114_v24 = vrot.slane %v105_v21, %v113_v22  ;;  %v1154_v1 = vld [vmem:[%s1528_s3 + $0x80] sm:$0xff]  }
  0x3d   :  { %v1160_v46 = vld [vmem:[%s1528_s3 + $0x98] sm:$0xff]   ;;  %v1162_v19 = vld [vmem:[%s1528_s3 + $0xa0] sm:$0xff]  }
  0x3f   :  { %1008 = vmatpush3.bf16.msra.mxu1 %v1146_v9 }
  0x40   :  { %1009 = vmatprep.subr.bf16.mxu1 %v1149_v12  ;;  %v1156_v12 = vld [vmem:[%s1528_s3 + $0x88] sm:$0xff]  }
  0x43   :  { %1010 = vmatpush3.bf16.msra.mxu1 %v1150_v13 }
  0x44   :  { %1023 = vmatprep.subr.bf16.mxu1 %v1153_v16  ;;  %v1157_v16 = vld [vmem:[%s1528_s3 + $0xd0] sm:$0xff]  }
  0x74   :  { %v69_v51 = vpop.permute.xlu0 %68 }
  0x75   :  { %v75_v55 = vsel %vm72_vm2, %v55_v49, %v69_v51 }
  0x76   :  { %276 = vmatmul.mubr.bf16.vlgmr.msra.gmra.mrb[0].mxu0 %v75_v55 }
  0x77   :  { %945 = vmatprep.mubr.msk.bf16.mxu0 %vm72_vm2, %v67_v52  ;;  %1052 = vmatpush3.bf16.msra.mxu0 %v1124_v50 }
  0x78   :  { %v71_v57 = vpop.permute.xlu0 %70  ;;  %1053 = vmatprep.subr.bf16.mxu0 %v1127_v54 }
  0x79   :  { %v79_v60 = vsel %vm72_vm2, %v56_v58, %v71_v57 }
  0x7b   :  { %1054 = vmatpush3.bf16.msra.mxu0 %v1128_v56 }
  0x7c   :  { %1055 = vmatprep.subr.bf16.mxu0 %v1131_v59 }
  0x7e   :  { %286 = vmatmul.mubr.bf16.gmra.mrb[4].mxu0 %v79_v60 }
  0x7f   :  { %1056 = vmatpush3.bf16.msra.mxu0 %v1132_v61 }
  0x80   :  { %1057 = vmatprep.subr.bf16.mxu0 %v1135_v62 }
  0x83   :  { %1058 = vmatpush3.bf16.msra.mxu0 %v1136_v63 }
  0x84   :  { %1059 = vmatprep.subr.bf16.mxu0 %v1139_v2 }
  0x87   :  { %1060 = vmatpush3.bf16.msra.mxu0 %v1140_v3 }
  0x88   :  { %1061 = vmatprep.subr.bf16.mxu0 %v1143_v6 }
  0x8b   :  { %1062 = vmatpush3.bf16.msra.mxu0 %v1144_v7 }
  0x8c   :  { %1063 = vmatprep.subr.bf16.mxu0 %v1147_v10 }
  0x8f   :  { %1064 = vmatpush3.bf16.msra.mxu0 %v1148_v11 }
  0x90   :  { %1065 = vmatprep.subr.bf16.mxu0 %v1151_v14 }
  0x93   :  { %1066 = vmatpush3.bf16.msra.mxu0 %v1152_v15 }
 0x149   :  { %v277_v25 = vpop.f32.mrb[0].mxu0 }
 0x14a   :  { %v278_v26 = vadd.f32 %v277_v25, %v110_v23  ;;  %v279_v27 = vpop.f32.mrb[1].mxu0 }
 0x14b   :  { %v280_v28 = vadd.f32 %v279_v27, %v114_v24  ;;  %v281_v29 = vpop.f32.mrb[2].mxu0  ;;  %v1159_v27 = vld [vmem:[%s1528_s3 + $0xd8] sm:$0xff]  }
 0x14c   :  { %v282_v30 = vadd.f32 %v281_v29, %v110_v23  ;;  %v283_v31 = vpop.f32.mrb[3].mxu0  ;;  %v296_v33 = vmax.f32 %v278_v26, 0.0  ;;  %v1161_v29 = vld [vmem:[%s1528_s3 + $0xe0] sm:$0xff]  }
 0x14d   :  { %v284_v32 = vadd.f32 %v283_v31, %v114_v24  ;;  %v297_v35 = vmax.f32 %v280_v28, 0.0  ;;  %v1164_v31 = vld [vmem:[%s1528_s3 + $0xa8] sm:$0xff]  }
 0x14e   :  { %v298_v34 = vmax.f32 %v282_v30, 0.0  ;;  %v1163_v30 = vld [vmem:[%s1528_s3 + $0xe8] sm:$0xff]  }
 0x14f   :  { %v299_v36 = vmax.f32 %v284_v32, 0.0  ;;  %v1165_v32 = vld [vmem:[%s1528_s3 + $0xf0] sm:$0xff]  }
 0x150   :  { %v1435_v37 = vpack.c.bf16 %v298_v34, %v296_v33  ;;  %v1166_v33 = vld [vmem:[%s1528_s3 + $0xb0] sm:$0xff]   ;;  %v1167_v34 = vld [vmem:[%s1528_s3 + $0xf8] sm:$0xff]  }
 0x151   :  { %v1437_v38 = vpack.c.bf16 %v299_v36, %v297_v35  ;;  %v287_v39 = vpop.f32.mrb[4].mxu0  ;;  %v1168_v35 = vld [vmem:[%s1528_s3 + $0xb8] sm:$0xff]  }
 0x152   :  { %v309_v40 = vshrl.u32 %v1435_v37, 16  ;;  %v288_v41 = vadd.f32 %v287_v39, %v110_v23  ;;  %v289_v42 = vpop.f32.mrb[5].mxu0  ;;  %v312_v43 = vshll.u32 %v1435_v37, 16 }
 0x153   :  { %v290_v44 = vadd.f32 %v289_v42, %v114_v24  ;;  %v291_v45 = vpop.f32.mrb[6].mxu0  ;;  %v316_v47 = vshrl.u32 %v1437_v38, 16  ;;  %v319_v48 = vshll.u32 %v1437_v38, 16 }
 0x154   :  { %v300_v49 = vmax.f32 %v288_v41, 0.0  ;;  %v292_v50 = vadd.f32 %v291_v45, %v110_v23  ;;  %v293_v51 = vpop.f32.mrb[7].mxu0  ;;  %v311_v52 = vrot.slane %v309_v40, 7  ;;  %v344_v53 = vrot.slane %v312_v43, 1 }
 0x155   :  { %v301_v54 = vmax.f32 %v290_v44, 0.0  ;;  %v294_v55 = vadd.f32 %v293_v51, %v114_v24  ;;  %v318_v56 = vrot.slane %v316_v47, 7  ;;  %v346_v57 = vrot.slane %v319_v48, 1  ;;  %v1158_v24 = vld [vmem:[%s1528_s3 + $0x90] sm:$0xff]  }
 0x156   :  { %v302_v58 = vmax.f32 %v292_v50, 0.0  ;;  %v314_v59 = vor.u32 %v312_v43, %v311_v52  ;;  %v345_v60 = vor.u32 %v344_v53, %v309_v40 }
 0x157   :  { %v303_v61 = vmax.f32 %v294_v55, 0.0  ;;  %v321_v62 = vor.u32 %v319_v48, %v318_v56  ;;  %v347_v63 = vor.u32 %v346_v57, %v316_v47 }
 0x158   :  { %v306_v0 = vpack.c.bf16 %v302_v58, %v300_v49  ;;  %v340_v7 = vsel %vm1346_vm6, 0, %v314_v59  ;;  %v356_v8 = vsel %vm1271_vm3, %v345_v60, 0 }
 0x159   :  { %v307_v2 = vpack.c.bf16 %v303_v61, %v301_v54  ;;  %v341_v3 = vsel %vm1346_vm6, 0, %v321_v62  ;;  %v357_v4 = vsel %vm1271_vm3, %v347_v63, 0  ;;  %v946_v61 = vld [vmem:[%s1529_s4] ss:$0 sm:$0xff]  ;;  %s1194_s4 = smov [#allocation2]  }
 0x15a   :  { %v323_v6 = vshrl.u32 %v306_v0, 16  ;;  %783 = vmatprep.mubr.bf16.mxu1 %v341_v3  ;;  %881 = vmatprep.mubr.bf16.mxu0 %v357_v4  ;;  %v326_v9 = vshll.u32 %v306_v0, 16  ;;  %s907_s9 = sshll.u32 %s1194_s4, 4  ;;  %s908_s9 = int_to_ptr.vmem [resolvable:$true] %s907_s9 }
 0x15b   :  { %v330_v10 = vshrl.u32 %v307_v2, 16  ;;  %784 = vmatmul.mubr.bf16.vlgmr.msra.gmra.mrb[0].mxu1 %v340_v7  ;;  %882 = vmatmul.mubr.bf16.vlgmr.msra.gmra.mrb[8].mxu0 %v356_v8  ;;  %v333_v11 = vshll.u32 %v307_v2, 16  ;;  %s1169_s10 = scalar_lea.vmem %s908_s9, 512  ;;  %p1174_p1 = scmp.lt.s32.totalorder %s908_s9, %s908_s9 }
 0x15c   :  { %1024 = vmatpush3.bf16.msra.mxu1 %v1154_v1  ;;  %v325_v13 = vrot.slane %v323_v6, 7  ;;  %v348_v14 = vrot.slane %v326_v9, 1  ;;  %p1170_p0 = scmp.ne.s32.totalorder %s908_s9, %s1169_s10  ;;  %p1175_p2 = scmp.lt.s32.totalorder %s1169_s10, %s1169_s10 }
 0x15d   :  { %1025 = vmatprep.subr.bf16.mxu1 %v1155_v5  ;;  %v332_v15 = vrot.slane %v330_v10, 7  ;;  %v350_v17 = vrot.slane %v333_v11, 1 }
 0x15e   :  { %v328_v18 = vor.u32 %v326_v9, %v325_v13  ;;  %v349_v20 = vor.u32 %v348_v14, %v323_v6  ;;  %p1176_p3 = por %p1175_p2, %p1174_p1 }
 0x15f   :  { %v335_v21 = vor.u32 %v333_v11, %v332_v15  ;;  %v351_v22 = vor.u32 %v350_v17, %v330_v10 }
 0x160   :  { %1026 = vmatpush3.bf16.msra.mxu1 %v1156_v12  ;;  %v342_v23 = vsel %vm1346_vm6, 0, %v328_v18  ;;  %v358_v25 = vsel %vm1271_vm3, %v349_v20, 0  ;;  %p1177_p4 = pnand %p1176_p3, %p1170_p0 }
 0x161   :  { %v343_v26 = vsel %vm1346_vm6, 0, %v335_v21  ;;  %1027 = vmatprep.subr.bf16.mxu1 %v1157_v16  ;;  %v359_v28 = vsel %vm1271_vm3, %v351_v22, 0 }
 0x162   :  { %791 = vmatprep.mubr.bf16.mxu1 %v343_v26  ;;  %889 = vmatprep.mubr.bf16.mxu0 %v359_v28 }
 0x163   :  { %792 = vmatmul.mubr.bf16.gmra.mrb[4].mxu1 %v342_v23  ;;  %890 = vmatmul.mubr.bf16.gmra.mrb[12].mxu0 %v358_v25 }
 0x164   :  { %1028 = vmatpush3.bf16.msra.mxu1 %v1158_v24  ;;  %832 = vmatprep.mubr.bf16.mxu1 %v1437_v38 }
 0x165   :  { %1029 = vmatprep.subr.bf16.mxu1 %v1159_v27 }
 0x168   :  { %1030 = vmatpush3.bf16.msra.mxu1 %v1160_v46 }
 0x169   :  { %1031 = vmatprep.subr.bf16.mxu1 %v1161_v29 }
 0x16c   :  { %1032 = vmatpush3.bf16.msra.mxu1 %v1162_v19 }
 0x16d   :  { %1033 = vmatprep.subr.bf16.mxu1 %v1163_v30 }
 0x170   :  { %1034 = vmatpush3.bf16.msra.mxu1 %v1164_v31 }
 0x171   :  { %1035 = vmatprep.subr.bf16.mxu1 %v1165_v32 }
 0x174   :  { %1036 = vmatpush3.bf16.msra.mxu1 %v1166_v33 }
 0x175   :  { %1037 = vmatprep.subr.bf16.mxu1 %v1167_v34 }
 0x178   :  { %1038 = vmatpush3.bf16.msra.mxu1 %v1168_v35 }
 0x17b   :  { %833 = vmatmul.mubr.bf16.vlgmr.msra.gmra.mrb[8].mxu1 %v1435_v37 }
 0x17c   :  { %840 = vmatprep.mubr.bf16.mxu1 %v307_v2 }
 0x183   :  { %841 = vmatmul.mubr.bf16.gmra.mrb[12].mxu1 %v306_v0 }
 0x22e   :  { %v1011_v36 = vpop.f32.mrb[0].mxu1  ;;  %v1067_v38 = vpop.f32.mrb[8].mxu0 }
 0x22f   :  { %v1012_v39 = vpop.f32.mrb[1].mxu1  ;;  %v1068_v40 = vpop.f32.mrb[9].mxu0 }
 0x230   :  { %v1013_v41 = vadd.f32 %v1012_v39, %v1011_v36  ;;  %v1069_v42 = vadd.f32 %v1068_v40, %v1067_v38  ;;  %v1014_v43 = vpop.f32.mrb[2].mxu1  ;;  %v1070_v44 = vpop.f32.mrb[10].mxu0 }
 0x231   :  { %v1015_v45 = vpop.f32.mrb[3].mxu1  ;;  %v1071_v47 = vpop.f32.mrb[11].mxu0 }
 0x232   :  { %v1016_v48 = vadd.f32 %v1015_v45, %v1014_v43  ;;  %v1072_v49 = vadd.f32 %v1071_v47, %v1070_v44  ;;  %v786_v0 = vadd.f32 %v1013_v41, %v946_v61 }
 0x234   :  { %v789_v4 = vadd.f32 %v1016_v48, %v946_v61 }
 0x236   :  { %v1017_v50 = vpop.f32.mrb[4].mxu1  ;;  %v1073_v51 = vpop.f32.mrb[12].mxu0 }
 0x237   :  { %v1018_v52 = vpop.f32.mrb[5].mxu1  ;;  %v1074_v53 = vpop.f32.mrb[13].mxu0 }
 0x238   :  { %v1019_v54 = vadd.f32 %v1018_v52, %v1017_v50  ;;  %v1075_v37 = vadd.f32 %v1074_v53, %v1073_v51  ;;  %v1020_v55 = vpop.f32.mrb[6].mxu1  ;;  %v1076_v56 = vpop.f32.mrb[14].mxu0 }
 0x239   :  { %v1021_v57 = vpop.f32.mrb[7].mxu1  ;;  %v1077_v58 = vpop.f32.mrb[15].mxu0 }
 0x23a   :  { %v1022_v59 = vadd.f32 %v1021_v57, %v1020_v55  ;;  %v1078_v60 = vadd.f32 %v1077_v58, %v1076_v56  ;;  %v794_v12 = vadd.f32 %v1019_v54, %v946_v61 }
 0x23c   :  { %v797_v16 = vadd.f32 %v1022_v59, %v946_v61 }
 0x24e   :  { %v1039_v62 = vpop.f32.mrb[8].mxu1 }
 0x24f   :  { %v1040_v63 = vpop.f32.mrb[9].mxu1 }
 0x250   :  { %v1041_v1 = vadd.f32 %v1040_v63, %v1039_v62  ;;  %v1042_v2 = vpop.f32.mrb[10].mxu1 }
 0x251   :  { %v1043_v3 = vpop.f32.mrb[11].mxu1 }
 0x252   :  { %v835_v5 = vadd.f32 %v1041_v1, %v786_v0  ;;  %v1044_v6 = vadd.f32 %v1043_v3, %v1042_v2 }
 0x254   :  { %v884_v7 = vadd.f32 %v1069_v42, %v835_v5  ;;  %v838_v8 = vadd.f32 %v1044_v6, %v789_v4 }
 0x256   :  { %898 = vst.msk [vmem:[#allocation2] sm:$0xff] %vm72_vm2, %v884_v7  ;;  %v887_v9 = vadd.f32 %v1072_v49, %v838_v8  ;;  %v1045_v10 = vpop.f32.mrb[12].mxu1 }
 0x257   :  { %v1046_v11 = vpop.f32.mrb[13].mxu1 }
 0x258   :  { %899 = vst.msk [vmem:[#allocation2 + $0x8] sm:$0xff] %vm72_vm2, %v887_v9  ;;  %v1047_v13 = vadd.f32 %v1046_v11, %v1045_v10  ;;  %v1048_v14 = vpop.f32.mrb[14].mxu1 }
 0x259   :  { %v1049_v15 = vpop.f32.mrb[15].mxu1 }
 0x25a   :  { %v843_v17 = vadd.f32 %v1047_v13, %v794_v12  ;;  %v1050_v18 = vadd.f32 %v1049_v15, %v1048_v14 }
 0x25c   :  { %v892_v20 = vadd.f32 %v1075_v37, %v843_v17  ;;  %v846_v21 = vadd.f32 %v1050_v18, %v797_v16 }
 0x25e   :  { %900 = vst.msk [vmem:[#allocation2 + $0x10] sm:$0xff] %vm72_vm2, %v892_v20  ;;  %v895_v22 = vadd.f32 %v1078_v60, %v846_v21 }
 0x260   :  { %901 = vst.msk [vmem:[#allocation2 + $0x18] sm:$0xff] %vm72_vm2, %v895_v22 }
 0x261   :  { %1180 = shalt.err (!%p1177_p4)
}
 0x262   :  { %s1181_s12 = scalar_lea.hbm %s1530_s5, 512 }
 0x263   :  { %p1182_p5 = scmp.ne.s32.totalorder %s1530_s5, %s1181_s12  ;;  %p1185_p6 = scmp.lt.u32.totalorder %s1181_s12, %s1530_s5 }
 0x265   :  { %p1187_p7 = pnand %p1185_p6, %p1182_p5 }
 0x267   :  { %1190 = shalt.err (!%p1187_p7)
}
 0x268   :  { %s1195_s17 = smov 128   ;;  %s1196_s18 = smov 8  }
 0x269   :  { %913 = dma.vmem_to_hbm [thread:$0]  %s908_s9, 512, %s1530_s5, [#allocation3], %s1195_s17, %s1195_s17, %s1196_s18  }
 0x26a   :  { %1191 = dma.done.wait [#allocation3], 512  }
 0x26b   :  { %1192 = vsyncadd [#allocation3], 4294966784 }
 0x26c   :  { %917 = vsyncpa [#allocation3], 1 }

</bundles_post_ra>
